<compile_context>
chip_gen: v5e
topology: v5e:2x2
jax: 0.10.0
libtpu: 0.0.40
codegen_flags: <defaults>
</compile_context>

<pallas_src>
import math

import jax
import jax.numpy as jnp
from jax import lax
from jax.experimental import pallas as pl
from jax.experimental.pallas import tpu as pltpu

# ----------------------------------------------------------------------------
# Synthetic config (stands in for cfg.*)
# ----------------------------------------------------------------------------
EMB_DIM = 32
PREDICTION_DIM = 8
BATCH_SIZE = 2
NUM_CONFORMERS_SAMPLE = 2
NODES_PER_CONFORMER = 8
NODES_PER_BARY = 8
NUM_TOKENS = 4  # [h_mol, h_gat, h_mace, h_bary]

_VMEM = pltpu.MemorySpace.VMEM


def _vmem_specs(n):
    return [pl.BlockSpec(memory_space=_VMEM) for _ in range(n)]


# ----------------------------------------------------------------------------
# The single fused kernel
# ----------------------------------------------------------------------------
def _fused_kernel(h_mol_ref, h_gat_ref,
                  nodes_ref, seg_ref,
                  w_bd_ref, b_cat_ref,
                  wqkv_ref, wo_ref,
                  w1_ref, b1_ref, w2_ref, b2_ref,
                  pred_ref, att_ref, gat_ref, mace_ref,
                  xtok_s):
    B, T, D = BATCH_SIZE, NUM_TOKENS, EMB_DIM
    f32 = jnp.float32

    h_mol = h_mol_ref[...]                                   # (B, D)
    h_gat = h_gat_ref[...]                                   # (B, D)

    # --- fused segment-mean pooling (the `self.aggr(x, batch)` aggregation) --
    # MACE nodes and barycenter nodes are concatenated host-side; barycenter
    # segment ids are offset by B so a single one-hot matmul pools both.
    # TODO(synk): cfg.NODE_AGGREGATION assumed to be mean pooling.
    nodes = nodes_ref[...]                                   # (N_all, D)
    seg = seg_ref[...]                                       # (1, N_all) int32
    n_all = nodes.shape[0]
    rows = lax.broadcasted_iota(jnp.int32, (2 * B, n_all), 0)
    onehot = (rows == seg).astype(f32)                       # (2B, N_all)
    pooled = jnp.dot(onehot, nodes, preferred_element_type=f32)       # (2B, D)
    cnt = jnp.maximum(jnp.sum(onehot, axis=-1, keepdims=True), 1.0)   # (2B, 1)
    pooled = pooled * pl.reciprocal(cnt, approx=True)
    h_mace = pooled[:B, :]                                   # (B, D)
    h_bary = pooled[B:, :]                                   # (B, D)

    # --- emb_gat / emb_mace / emb_bary residual branches, batched into one
    #     block-diagonal (3D, 3D) matmul:  y = x + SiLU(x @ W_bd + b_cat) ---
    x3 = jnp.concatenate([h_gat, h_mace, h_bary], axis=-1)   # (B, 3D)
    a3 = jnp.dot(x3, w_bd_ref[...], preferred_element_type=f32) + b_cat_ref[...]
    a3 = a3 * jax.nn.sigmoid(a3)          # SiLU; Dropout(0.5) = identity (eval)
    y3 = x3 + a3                          # [h_gat' | h_mace' | h_bary']

    h_gat2 = y3[:, 0 * D:1 * D]
    h_mace2 = y3[:, 1 * D:2 * D]
    h_bary2 = y3[:, 2 * D:3 * D]
    gat_ref[...] = h_gat2
    mace_ref[...] = h_mace2

    # --- token assembly: x = cat([h_mol, h_gat, h_mace, h_bary], -1).view(B,4,D)
    #     built via static stores into a VMEM scratch (no lane<->sublane
    #     reshape on the input side). ---
    xtok_s[:, 0, :] = h_mol
    xtok_s[:, 1, :] = h_gat2
    xtok_s[:, 2, :] = h_mace2
    xtok_s[:, 3, :] = h_bary2
    x = xtok_s[...]                                          # (B, T, D)

    # --- TransformerBlock stand-in: single-head scaled-dot-product attention
    #     with output projection + residual, returning the attention map.
    # TODO(synk): TransformerBlock internals are not given in the spec.
    qkv = jnp.einsum('btd,de->bte', x, wqkv_ref[...],
                     preferred_element_type=f32)             # (B, T, 3D)
    q = qkv[..., 0 * D:1 * D]
    k = qkv[..., 1 * D:2 * D]
    v = qkv[..., 2 * D:3 * D]

    scores = jnp.einsum('bqe,bke->bqk', q, k,
                        preferred_element_type=f32) * (1.0 / math.sqrt(D))
    scores = scores - jnp.max(scores, axis=-1, keepdims=True)
    p = jnp.exp(scores)
    att = p * pl.reciprocal(jnp.sum(p, axis=-1, keepdims=True), approx=True)  # (B,T,T)

    ctx = jnp.einsum('bqk,bke->bqe', att, v, preferred_element_type=f32)
    mixed = jnp.einsum('bte,ed->btd', ctx, wo_ref[...],
                       preferred_element_type=f32) + x       # residual
    att_ref[...] = att

    # --- lin_out: Linear(4D, D) -> SiLU -> Dropout(id) -> Linear(D, P) ------
    # The (B,T,D)->(B,4D) view is replaced by a per-token weight split:
    #   h = b1 + sum_t mixed[:, t, :] @ W1[t]     (W1 pre-split host-side)
    h = b1_ref[...]                                          # (1, D) broadcast
    for t in range(T):                                       # static unroll
        h = h + jnp.dot(mixed[:, t, :], w1_ref[t],
                        preferred_element_type=f32)
    h = h * jax.nn.sigmoid(h)
    pred_ref[...] = jnp.dot(h, w2_ref[...], preferred_element_type=f32) + b2_ref[...]


# ----------------------------------------------------------------------------
# Parameter init (deterministic, PyTorch nn.Linear-style uniform).
# Branch weights packed once into a block-diagonal matrix; Q/K/V packed into a
# single (D, 3D) projection; lin_out's first layer pre-split per token.
# ----------------------------------------------------------------------------
def _linear_init(key, fan_in, fan_out):
    kw, kb = jax.random.split(key)
    bound = 1.0 / math.sqrt(fan_in)
    w = jax.random.uniform(kw, (fan_in, fan_out), jnp.float32, -bound, bound)
    b = jax.random.uniform(kb, (1, fan_out), jnp.float32, -bound, bound)
    return w, b


def init_params(key):
    keys = jax.random.split(key, 9)
    D, T = EMB_DIM, NUM_TOKENS

    wg, bg = _linear_init(keys[0], D, D)   # emb_gat
    wm, bm = _linear_init(keys[1], D, D)   # emb_mace
    wb, bb = _linear_init(keys[2], D, D)   # emb_bary
    w_bd = jnp.zeros((3 * D, 3 * D), jnp.float32)
    w_bd = (w_bd.at[0 * D:1 * D, 0 * D:1 * D].set(wg)
                 .at[1 * D:2 * D, 1 * D:2 * D].set(wm)
                 .at[2 * D:3 * D, 2 * D:3 * D].set(wb))
    b_cat = jnp.concatenate([bg, bm, bb], axis=-1)           # (1, 3D)

    wq, _ = _linear_init(keys[3], D, D)
    wk, _ = _linear_init(keys[4], D, D)
    wv, _ = _linear_init(keys[5], D, D)
    wqkv = jnp.concatenate([wq, wk, wv], axis=-1)            # (D, 3D)
    wo, _ = _linear_init(keys[6], D, D)

    w1, b1 = _linear_init(keys[7], D * T, D)                 # lin_out[0]
    w1 = w1.reshape(T, D, D)                                 # per-token split
    w2, b2 = _linear_init(keys[8], D, PREDICTION_DIM)        # lin_out[3]

    return {'w_bd': w_bd, 'b_cat': b_cat, 'wqkv': wqkv, 'wo': wo,
            'lin1_w': w1, 'lin1_b': b1, 'lin2_w': w2, 'lin2_b': b2}


# ----------------------------------------------------------------------------
# Forward pass (mirrors MolPredictor.forward) — one pallas_call total.
# ----------------------------------------------------------------------------
def mol_predictor_forward(params, h_mol, h_gat, h_mace_nodes, mace_batch,
                          bary_nodes, bary_batch):
    # TODO(synk): FeatureEmbedder / GAT / MACEBaryModel are external encoders;
    # their outputs (h_mol, h_gat, per-node embeddings) are inputs here.
    # rebatch(): the conformer -> molecule index mapping is applied by the
    # caller, so mace_batch already holds molecule indices in [0, B).
    B, D, T, P = BATCH_SIZE, EMB_DIM, NUM_TOKENS, PREDICTION_DIM

    # Host-side layout plumbing: fuse the two segment-mean pools into one.
    nodes_all = jnp.concatenate(
        [h_mace_nodes.astype(jnp.float32), bary_nodes.astype(jnp.float32)],
        axis=0)                                              # (N_mace+N_bary, D)
    seg_all = jnp.concatenate(
        [mace_batch.astype(jnp.int32), bary_batch.astype(jnp.int32) + B],
        axis=0).reshape(1, -1)                               # (1, N_all)

    cost = pl.CostEstimate(flops=150_000, transcendentals=400,
                           bytes_accessed=90_000)

    pred, att, gat_emb, mace_emb = pl.pallas_call(
        _fused_kernel,
        out_shape=(jax.ShapeDtypeStruct((B, P), jnp.float32),       # pred
                   jax.ShapeDtypeStruct((B, T, T), jnp.float32),    # att
                   jax.ShapeDtypeStruct((B, D), jnp.float32),       # gat_emb
                   jax.ShapeDtypeStruct((B, D), jnp.float32)),      # mace_emb
        in_specs=_vmem_specs(12),
        out_specs=(pl.BlockSpec(memory_space=_VMEM),
                   pl.BlockSpec(memory_space=_VMEM),
                   pl.BlockSpec(memory_space=_VMEM),
                   pl.BlockSpec(memory_space=_VMEM)),
        scratch_shapes=[pltpu.VMEM((B, T, D), jnp.float32)],
        cost_estimate=cost,
    )(h_mol.astype(jnp.float32), h_gat.astype(jnp.float32),
      nodes_all, seg_all,
      params['w_bd'], params['b_cat'],
      params['wqkv'], params['wo'],
      params['lin1_w'], params['lin1_b'], params['lin2_w'], params['lin2_b'])

    return {'pred': pred, 'mol_emb': h_mol, 'gat_emb': gat_emb,
            'mace_emb': mace_emb, 'att': att}


# ----------------------------------------------------------------------------
if __name__ == "__main__":
    key = jax.random.PRNGKey(0)
    k_par, k_mol, k_gat, k_mace, k_bary = jax.random.split(key, 5)

    params = init_params(k_par)

    h_mol = jax.random.normal(k_mol, (BATCH_SIZE, EMB_DIM), jnp.float32)
    h_gat = jax.random.normal(k_gat, (BATCH_SIZE, EMB_DIM), jnp.float32)

    n_mace = BATCH_SIZE * NUM_CONFORMERS_SAMPLE * NODES_PER_CONFORMER
    h_mace_nodes = jax.random.normal(k_mace, (n_mace, EMB_DIM), jnp.float32)
    # rebatched: each molecule owns NUM_CONFORMERS_SAMPLE * NODES_PER_CONFORMER nodes
    mace_batch = jnp.repeat(jnp.arange(BATCH_SIZE, dtype=jnp.int32),
                            NUM_CONFORMERS_SAMPLE * NODES_PER_CONFORMER)

    n_bary = BATCH_SIZE * NODES_PER_BARY
    bary_nodes = jax.random.normal(k_bary, (n_bary, EMB_DIM), jnp.float32)
    bary_batch = jnp.repeat(jnp.arange(BATCH_SIZE, dtype=jnp.int32), NODES_PER_BARY)

    fwd = jax.jit(mol_predictor_forward)
    out = fwd(params, h_mol, h_gat, h_mace_nodes, mace_batch,
              bary_nodes, bary_batch)
    jax.block_until_ready(out['pred'])
    jax.block_until_ready(out['att'])

    assert out['pred'].shape == (BATCH_SIZE, PREDICTION_DIM)
    assert out['att'].shape == (BATCH_SIZE, NUM_TOKENS, NUM_TOKENS)
    assert out['gat_emb'].shape == (BATCH_SIZE, EMB_DIM)
    assert out['mace_emb'].shape == (BATCH_SIZE, EMB_DIM)
    assert out['mol_emb'].shape == (BATCH_SIZE, EMB_DIM)
    print("KERNEL_OK")
</pallas_src>

<mosaic_0001>
module attributes {stable_mosaic.version = 11 : i64} {
  func.func @_fused_kernel(%arg0: memref<2x32xf32, #tpu.memory_space<vmem>>, %arg1: memref<2x32xf32, #tpu.memory_space<vmem>>, %arg2: memref<48x32xf32, #tpu.memory_space<vmem>>, %arg3: memref<1x48xi32, #tpu.memory_space<vmem>>, %arg4: memref<96x96xf32, #tpu.memory_space<vmem>>, %arg5: memref<1x96xf32, #tpu.memory_space<vmem>>, %arg6: memref<32x96xf32, #tpu.memory_space<vmem>>, %arg7: memref<32x32xf32, #tpu.memory_space<vmem>>, %arg8: memref<4x32x32xf32, #tpu.memory_space<vmem>>, %arg9: memref<1x32xf32, #tpu.memory_space<vmem>>, %arg10: memref<32x8xf32, #tpu.memory_space<vmem>>, %arg11: memref<1x8xf32, #tpu.memory_space<vmem>>, %arg12: memref<2x8xf32, #tpu.memory_space<vmem>>, %arg13: memref<2x4x4xf32, #tpu.memory_space<vmem>>, %arg14: memref<2x32xf32, #tpu.memory_space<vmem>>, %arg15: memref<2x32xf32, #tpu.memory_space<vmem>>, %arg16: memref<2x4x32xf32, #tpu.memory_space<vmem>>) attributes {dimension_semantics = [], scalar_prefetch = 0 : i64, scratch_operands = 1 : i64, tpu.core_type = #tpu.core_type<tc>} {
    %c0 = arith.constant 0 : index
    %c0_0 = arith.constant 0 : index
    %0 = vector.load %arg0[%c0, %c0_0] : memref<2x32xf32, #tpu.memory_space<vmem>>, vector<2x32xf32>
    %c0_1 = arith.constant 0 : index
    %c0_2 = arith.constant 0 : index
    %1 = vector.load %arg1[%c0_1, %c0_2] : memref<2x32xf32, #tpu.memory_space<vmem>>, vector<2x32xf32>
    %c0_3 = arith.constant 0 : index
    %c0_4 = arith.constant 0 : index
    %2 = vector.load %arg2[%c0_3, %c0_4] : memref<48x32xf32, #tpu.memory_space<vmem>>, vector<48x32xf32>
    %c0_5 = arith.constant 0 : index
    %c0_6 = arith.constant 0 : index
    %3 = vector.load %arg3[%c0_5, %c0_6] : memref<1x48xi32, #tpu.memory_space<vmem>>, vector<1x48xi32>
    %4 = tpu.iota {dimensions = array<i32: 0>} : vector<4x48xi32>
    %5 = vector.broadcast %3 : vector<1x48xi32> to vector<4x48xi32>
    %6 = arith.cmpi eq, %4, %5 : vector<4x48xi32>
    %7 = arith.extui %6 : vector<4x48xi1> to vector<4x48xi32>
    %8 = arith.sitofp %7 : vector<4x48xi32> to vector<4x48xf32>
    %cst = arith.constant dense<0.000000e+00> : vector<4x32xf32>
    %9 = tpu.matmul %8, %2, %cst {dimension_numbers = #tpu.dot_dimension_numbers<[1], [0], [0], [1], [0, 0, 1, 1], [], []>} : vector<4x48xf32>, vector<48x32xf32>, vector<4x32xf32> -> vector<4x32xf32>
    %cst_7 = arith.constant dense<0.000000e+00> : vector<4xf32>
    %10 = vector.multi_reduction <add>, %8, %cst_7 [1] : vector<4x48xf32> to vector<4xf32>
    %11 = vector.shape_cast %10 : vector<4xf32> to vector<4x1xf32>
    %cst_8 = arith.constant 1.000000e+00 : f32
    %12 = vector.broadcast %cst_8 : f32 to vector<4x1xf32>
    %13 = arith.maximumf %11, %12 : vector<4x1xf32>
    %14 = tpu.reciprocal %13 {approx = true} : vector<4x1xf32> -> vector<4x1xf32>
    %15 = vector.broadcast %14 : vector<4x1xf32> to vector<4x32xf32>
    %16 = arith.mulf %9, %15 : vector<4x32xf32>
    %17 = vector.extract_strided_slice %16 {offsets = [0, 0], sizes = [2, 32], strides = [1, 1]} : vector<4x32xf32> to vector<2x32xf32>
    %18 = vector.extract_strided_slice %16 {offsets = [2, 0], sizes = [2, 32], strides = [1, 1]} : vector<4x32xf32> to vector<2x32xf32>
    %19 = tpu.concatenate %1, %17, %18 in 1 : vector<2x32xf32>, vector<2x32xf32>, vector<2x32xf32> -> vector<2x96xf32>
    %c0_9 = arith.constant 0 : index
    %c0_10 = arith.constant 0 : index
    %20 = vector.load %arg4[%c0_9, %c0_10] : memref<96x96xf32, #tpu.memory_space<vmem>>, vector<96x96xf32>
    %cst_11 = arith.constant dense<0.000000e+00> : vector<2x96xf32>
    %21 = tpu.matmul %19, %20, %cst_11 {dimension_numbers = #tpu.dot_dimension_numbers<[1], [0], [0], [1], [0, 0, 1, 1], [], []>} : vector<2x96xf32>, vector<96x96xf32>, vector<2x96xf32> -> vector<2x96xf32>
    %c0_12 = arith.constant 0 : index
    %c0_13 = arith.constant 0 : index
    %22 = vector.load %arg5[%c0_12, %c0_13] : memref<1x96xf32, #tpu.memory_space<vmem>>, vector<1x96xf32>
    %23 = vector.broadcast %22 : vector<1x96xf32> to vector<2x96xf32>
    %24 = arith.addf %21, %23 : vector<2x96xf32>
    %25 = arith.negf %24 : vector<2x96xf32>
    %26 = math.exp %25 : vector<2x96xf32>
    %cst_14 = arith.constant 1.000000e+00 : f32
    %27 = vector.broadcast %cst_14 : f32 to vector<2x96xf32>
    %28 = arith.addf %27, %26 : vector<2x96xf32>
    %29 = arith.divf %27, %28 : vector<2x96xf32>
    %30 = arith.mulf %24, %29 : vector<2x96xf32>
    %31 = arith.addf %19, %30 : vector<2x96xf32>
    %32 = vector.extract_strided_slice %31 {offsets = [0, 0], sizes = [2, 32], strides = [1, 1]} : vector<2x96xf32> to vector<2x32xf32>
    %33 = vector.extract_strided_slice %31 {offsets = [0, 32], sizes = [2, 32], strides = [1, 1]} : vector<2x96xf32> to vector<2x32xf32>
    %34 = vector.extract_strided_slice %31 {offsets = [0, 64], sizes = [2, 32], strides = [1, 1]} : vector<2x96xf32> to vector<2x32xf32>
    %c0_15 = arith.constant 0 : index
    %c0_16 = arith.constant 0 : index
    %35 = vector.load %arg14[%c0_15, %c0_16] : memref<2x32xf32, #tpu.memory_space<vmem>>, vector<2x32xf32>
    tpu.vector_store %arg14[%c0_15, %c0_16], %32 {strides = array<i32>} : memref<2x32xf32, #tpu.memory_space<vmem>>, vector<2x32xf32>,
    %c0_17 = arith.constant 0 : index
    %c0_18 = arith.constant 0 : index
    %36 = vector.load %arg15[%c0_17, %c0_18] : memref<2x32xf32, #tpu.memory_space<vmem>>, vector<2x32xf32>
    tpu.vector_store %arg15[%c0_17, %c0_18], %33 {strides = array<i32>} : memref<2x32xf32, #tpu.memory_space<vmem>>, vector<2x32xf32>,
    %c0_19 = arith.constant 0 : index
    %c0_20 = arith.constant 0 : index
    %c0_21 = arith.constant 0 : index
    %37 = vector.load %arg16[%c0_19, %c0_20, %c0_21] : memref<2x4x32xf32, #tpu.memory_space<vmem>>, vector<2x1x32xf32>
    %38 = vector.shape_cast %37 : vector<2x1x32xf32> to vector<2x32xf32>
    %39 = vector.shape_cast %0 : vector<2x32xf32> to vector<2x1x32xf32>
    tpu.vector_store %arg16[%c0_19, %c0_20, %c0_21], %39 {strides = array<i32>} : memref<2x4x32xf32, #tpu.memory_space<vmem>>, vector<2x1x32xf32>,
    %c0_22 = arith.constant 0 : index
    %c1 = arith.constant 1 : index
    %c0_23 = arith.constant 0 : index
    %40 = vector.load %arg16[%c0_22, %c1, %c0_23] : memref<2x4x32xf32, #tpu.memory_space<vmem>>, vector<2x1x32xf32>
    %41 = vector.shape_cast %40 : vector<2x1x32xf32> to vector<2x32xf32>
    %42 = vector.shape_cast %32 : vector<2x32xf32> to vector<2x1x32xf32>
    tpu.vector_store %arg16[%c0_22, %c1, %c0_23], %42 {strides = array<i32>} : memref<2x4x32xf32, #tpu.memory_space<vmem>>, vector<2x1x32xf32>,
    %c0_24 = arith.constant 0 : index
    %c2 = arith.constant 2 : index
    %c0_25 = arith.constant 0 : index
    %43 = vector.load %arg16[%c0_24, %c2, %c0_25] : memref<2x4x32xf32, #tpu.memory_space<vmem>>, vector<2x1x32xf32>
    %44 = vector.shape_cast %43 : vector<2x1x32xf32> to vector<2x32xf32>
    %45 = vector.shape_cast %33 : vector<2x32xf32> to vector<2x1x32xf32>
    tpu.vector_store %arg16[%c0_24, %c2, %c0_25], %45 {strides = array<i32>} : memref<2x4x32xf32, #tpu.memory_space<vmem>>, vector<2x1x32xf32>,
    %c0_26 = arith.constant 0 : index
    %c3 = arith.constant 3 : index
    %c0_27 = arith.constant 0 : index
    %46 = vector.load %arg16[%c0_26, %c3, %c0_27] : memref<2x4x32xf32, #tpu.memory_space<vmem>>, vector<2x1x32xf32>
    %47 = vector.shape_cast %46 : vector<2x1x32xf32> to vector<2x32xf32>
    %48 = vector.shape_cast %34 : vector<2x32xf32> to vector<2x1x32xf32>
    tpu.vector_store %arg16[%c0_26, %c3, %c0_27], %48 {strides = array<i32>} : memref<2x4x32xf32, #tpu.memory_space<vmem>>, vector<2x1x32xf32>,
    %c0_28 = arith.constant 0 : index
    %c0_29 = arith.constant 0 : index
    %c0_30 = arith.constant 0 : index
    %49 = vector.load %arg16[%c0_28, %c0_29, %c0_30] : memref<2x4x32xf32, #tpu.memory_space<vmem>>, vector<2x4x32xf32>
    %c0_31 = arith.constant 0 : index
    %c0_32 = arith.constant 0 : index
    %50 = vector.load %arg6[%c0_31, %c0_32] : memref<32x96xf32, #tpu.memory_space<vmem>>, vector<32x96xf32>
    "tpu.trace_start"() <{level = 10 : i32, message = "btd,de->bte"}> : () -> ()
    %cst_33 = arith.constant dense<0.000000e+00> : vector<2x4x96xf32>
    %51 = tpu.matmul %49, %50, %cst_33 {dimension_numbers = #tpu.dot_dimension_numbers<[2], [0], [0, 1], [1], [0, 0, 0, 1, 1, 1], [], []>} : vector<2x4x32xf32>, vector<32x96xf32>, vector<2x4x96xf32> -> vector<2x4x96xf32>
    "tpu.trace_stop"() : () -> ()
    %52 = vector.extract_strided_slice %51 {offsets = [0, 0, 0], sizes = [2, 4, 32], strides = [1, 1, 1]} : vector<2x4x96xf32> to vector<2x4x32xf32>
    %53 = vector.extract_strided_slice %51 {offsets = [0, 0, 32], sizes = [2, 4, 32], strides = [1, 1, 1]} : vector<2x4x96xf32> to vector<2x4x32xf32>
    %54 = vector.extract_strided_slice %51 {offsets = [0, 0, 64], sizes = [2, 4, 32], strides = [1, 1, 1]} : vector<2x4x96xf32> to vector<2x4x32xf32>
    "tpu.trace_start"() <{level = 10 : i32, message = "bqe,bke->bqk"}> : () -> ()
    %cst_34 = arith.constant dense<0.000000e+00> : vector<2x4x4xf32>
    %55 = tpu.matmul %52, %53, %cst_34 {dimension_numbers = #tpu.dot_dimension_numbers<[2], [2], [1], [1], [0, 0, 0, 1, 1, 1], [0], [0]>} : vector<2x4x32xf32>, vector<2x4x32xf32>, vector<2x4x4xf32> -> vector<2x4x4xf32>
    "tpu.trace_stop"() : () -> ()
    %cst_35 = arith.constant 0.176776692 : f32
    %56 = vector.broadcast %cst_35 : f32 to vector<2x4x4xf32>
    %57 = arith.mulf %55, %56 : vector<2x4x4xf32>
    %cst_36 = arith.constant dense<0xFF800000> : vector<2x4xf32>
    %58 = vector.multi_reduction <maximumf>, %57, %cst_36 [2] : vector<2x4x4xf32> to vector<2x4xf32>
    %59 = vector.shape_cast %58 : vector<2x4xf32> to vector<2x4x1xf32>
    %60 = vector.broadcast %59 : vector<2x4x1xf32> to vector<2x4x4xf32>
    %61 = arith.subf %57, %60 : vector<2x4x4xf32>
    %62 = math.exp %61 : vector<2x4x4xf32>
    %cst_37 = arith.constant dense<0.000000e+00> : vector<2x4xf32>
    %63 = vector.multi_reduction <add>, %62, %cst_37 [2] : vector<2x4x4xf32> to vector<2x4xf32>
    %64 = vector.shape_cast %63 : vector<2x4xf32> to vector<2x4x1xf32>
    %65 = tpu.reciprocal %64 {approx = true} : vector<2x4x1xf32> -> vector<2x4x1xf32>
    %66 = vector.broadcast %65 : vector<2x4x1xf32> to vector<2x4x4xf32>
    %67 = arith.mulf %62, %66 : vector<2x4x4xf32>
    "tpu.trace_start"() <{level = 10 : i32, message = "bqk,bke->bqe"}> : () -> ()
    %cst_38 = arith.constant dense<0.000000e+00> : vector<2x4x32xf32>
    %68 = tpu.matmul %67, %54, %cst_38 {dimension_numbers = #tpu.dot_dimension_numbers<[2], [1], [1], [2], [0, 0, 0, 1, 1, 2], [0], [0]>} : vector<2x4x4xf32>, vector<2x4x32xf32>, vector<2x4x32xf32> -> vector<2x4x32xf32>
    "tpu.trace_stop"() : () -> ()
    %c0_39 = arith.constant 0 : index
    %c0_40 = arith.constant 0 : index
    %69 = vector.load %arg7[%c0_39, %c0_40] : memref<32x32xf32, #tpu.memory_space<vmem>>, vector<32x32xf32>
    "tpu.trace_start"() <{level = 10 : i32, message = "bte,ed->btd"}> : () -> ()
    %cst_41 = arith.constant dense<0.000000e+00> : vector<2x4x32xf32>
    %70 = tpu.matmul %68, %69, %cst_41 {dimension_numbers = #tpu.dot_dimension_numbers<[2], [0], [0, 1], [1], [0, 0, 0, 1, 1, 1], [], []>} : vector<2x4x32xf32>, vector<32x32xf32>, vector<2x4x32xf32> -> vector<2x4x32xf32>
    "tpu.trace_stop"() : () -> ()
    %71 = arith.addf %70, %49 : vector<2x4x32xf32>
    %c0_42 = arith.constant 0 : index
    %c0_43 = arith.constant 0 : index
    %c0_44 = arith.constant 0 : index
    %72 = vector.load %arg13[%c0_42, %c0_43, %c0_44] : memref<2x4x4xf32, #tpu.memory_space<vmem>>, vector<2x4x4xf32>
    tpu.vector_store %arg13[%c0_42, %c0_43, %c0_44], %67 {strides = array<i32>} : memref<2x4x4xf32, #tpu.memory_space<vmem>>, vector<2x4x4xf32>,
    %c0_45 = arith.constant 0 : index
    %c0_46 = arith.constant 0 : index
    %73 = vector.load %arg9[%c0_45, %c0_46] : memref<1x32xf32, #tpu.memory_space<vmem>>, vector<1x32xf32>
    %74 = vector.extract_strided_slice %71 {offsets = [0, 0, 0], sizes = [2, 1, 32], strides = [1, 1, 1]} : vector<2x4x32xf32> to vector<2x1x32xf32>
    %75 = vector.shape_cast %74 : vector<2x1x32xf32> to vector<2x32xf32>
    %c0_47 = arith.constant 0 : index
    %c0_48 = arith.constant 0 : index
    %c0_49 = arith.constant 0 : index
    %76 = vector.load %arg8[%c0_47, %c0_48, %c0_49] : memref<4x32x32xf32, #tpu.memory_space<vmem>>, vector<1x32x32xf32>
    %77 = vector.shape_cast %76 : vector<1x32x32xf32> to vector<32x32xf32>
    %cst_50 = arith.constant dense<0.000000e+00> : vector<2x32xf32>
    %78 = tpu.matmul %75, %77, %cst_50 {dimension_numbers = #tpu.dot_dimension_numbers<[1], [0], [0], [1], [0, 0, 1, 1], [], []>} : vector<2x32xf32>, vector<32x32xf32>, vector<2x32xf32> -> vector<2x32xf32>
    %79 = vector.broadcast %73 : vector<1x32xf32> to vector<2x32xf32>
    %80 = arith.addf %79, %78 : vector<2x32xf32>
    %81 = vector.extract_strided_slice %71 {offsets = [0, 1, 0], sizes = [2, 1, 32], strides = [1, 1, 1]} : vector<2x4x32xf32> to vector<2x1x32xf32>
    %82 = vector.shape_cast %81 : vector<2x1x32xf32> to vector<2x32xf32>
    %c1_51 = arith.constant 1 : index
    %c0_52 = arith.constant 0 : index
    %c0_53 = arith.constant 0 : index
    %83 = vector.load %arg8[%c1_51, %c0_52, %c0_53] : memref<4x32x32xf32, #tpu.memory_space<vmem>>, vector<1x32x32xf32>
    %84 = vector.shape_cast %83 : vector<1x32x32xf32> to vector<32x32xf32>
    %cst_54 = arith.constant dense<0.000000e+00> : vector<2x32xf32>
    %85 = tpu.matmul %82, %84, %cst_54 {dimension_numbers = #tpu.dot_dimension_numbers<[1], [0], [0], [1], [0, 0, 1, 1], [], []>} : vector<2x32xf32>, vector<32x32xf32>, vector<2x32xf32> -> vector<2x32xf32>
    %86 = arith.addf %80, %85 : vector<2x32xf32>
    %87 = vector.extract_strided_slice %71 {offsets = [0, 2, 0], sizes = [2, 1, 32], strides = [1, 1, 1]} : vector<2x4x32xf32> to vector<2x1x32xf32>
    %88 = vector.shape_cast %87 : vector<2x1x32xf32> to vector<2x32xf32>
    %c2_55 = arith.constant 2 : index
    %c0_56 = arith.constant 0 : index
    %c0_57 = arith.constant 0 : index
    %89 = vector.load %arg8[%c2_55, %c0_56, %c0_57] : memref<4x32x32xf32, #tpu.memory_space<vmem>>, vector<1x32x32xf32>
    %90 = vector.shape_cast %89 : vector<1x32x32xf32> to vector<32x32xf32>
    %cst_58 = arith.constant dense<0.000000e+00> : vector<2x32xf32>
    %91 = tpu.matmul %88, %90, %cst_58 {dimension_numbers = #tpu.dot_dimension_numbers<[1], [0], [0], [1], [0, 0, 1, 1], [], []>} : vector<2x32xf32>, vector<32x32xf32>, vector<2x32xf32> -> vector<2x32xf32>
    %92 = arith.addf %86, %91 : vector<2x32xf32>
    %93 = vector.extract_strided_slice %71 {offsets = [0, 3, 0], sizes = [2, 1, 32], strides = [1, 1, 1]} : vector<2x4x32xf32> to vector<2x1x32xf32>
    %94 = vector.shape_cast %93 : vector<2x1x32xf32> to vector<2x32xf32>
    %c3_59 = arith.constant 3 : index
    %c0_60 = arith.constant 0 : index
    %c0_61 = arith.constant 0 : index
    %95 = vector.load %arg8[%c3_59, %c0_60, %c0_61] : memref<4x32x32xf32, #tpu.memory_space<vmem>>, vector<1x32x32xf32>
    %96 = vector.shape_cast %95 : vector<1x32x32xf32> to vector<32x32xf32>
    %cst_62 = arith.constant dense<0.000000e+00> : vector<2x32xf32>
    %97 = tpu.matmul %94, %96, %cst_62 {dimension_numbers = #tpu.dot_dimension_numbers<[1], [0], [0], [1], [0, 0, 1, 1], [], []>} : vector<2x32xf32>, vector<32x32xf32>, vector<2x32xf32> -> vector<2x32xf32>
    %98 = arith.addf %92, %97 : vector<2x32xf32>
    %99 = arith.negf %98 : vector<2x32xf32>
    %100 = math.exp %99 : vector<2x32xf32>
    %cst_63 = arith.constant 1.000000e+00 : f32
    %101 = vector.broadcast %cst_63 : f32 to vector<2x32xf32>
    %102 = arith.addf %101, %100 : vector<2x32xf32>
    %103 = arith.divf %101, %102 : vector<2x32xf32>
    %104 = arith.mulf %98, %103 : vector<2x32xf32>
    %c0_64 = arith.constant 0 : index
    %c0_65 = arith.constant 0 : index
    %105 = vector.load %arg10[%c0_64, %c0_65] : memref<32x8xf32, #tpu.memory_space<vmem>>, vector<32x8xf32>
    %cst_66 = arith.constant dense<0.000000e+00> : vector<2x8xf32>
    %106 = tpu.matmul %104, %105, %cst_66 {dimension_numbers = #tpu.dot_dimension_numbers<[1], [0], [0], [1], [0, 0, 1, 1], [], []>} : vector<2x32xf32>, vector<32x8xf32>, vector<2x8xf32> -> vector<2x8xf32>
    %c0_67 = arith.constant 0 : index
    %c0_68 = arith.constant 0 : index
    %107 = vector.load %arg11[%c0_67, %c0_68] : memref<1x8xf32, #tpu.memory_space<vmem>>, vector<1x8xf32>
    %108 = vector.broadcast %107 : vector<1x8xf32> to vector<2x8xf32>
    %109 = arith.addf %106, %108 : vector<2x8xf32>
    %c0_69 = arith.constant 0 : index
    %c0_70 = arith.constant 0 : index
    %110 = vector.load %arg12[%c0_69, %c0_70] : memref<2x8xf32, #tpu.memory_space<vmem>>, vector<2x8xf32>
    tpu.vector_store %arg12[%c0_69, %c0_70], %109 {strides = array<i32>} : memref<2x8xf32, #tpu.memory_space<vmem>>, vector<2x8xf32>,
    return
  }
}

</mosaic_0001>

<bundles_post_ra>
// kernel: mol_predictor_forward.1
= control target key start
LH: loop header
LB: loop body
LE: loop exit
PB: predicated region body
PF: predicated region fallthrough
CT: control target
= control target key end

     0   :  { %21 = vsyncpa [#allocation4], 0  ;;  %s1229_s0 = inlined_call_operand.vmem [shape: f32[2,32], index: 0, kind: input, shape index: {}]   ;;  %s1230_s1 = inlined_call_operand.vmem [shape: f32[2,32], index: 1, kind: input, shape index: {}]   ;;  %s1231_s2 = inlined_call_operand.vmem [shape: f32[48,32], index: 2, kind: input, shape index: {}]   ;;  %s1232_s3 = inlined_call_operand.vmem [shape: s32[1,48], index: 3, kind: input, shape index: {}]   ;;  %s1233_s4 = inlined_call_operand.hbm [shape: f32[96,96], index: 4, kind: input, shape index: {}]   ;;  %s1234_s5 = inlined_call_operand.vmem [shape: f32[1,96], index: 5, kind: input, shape index: {}]   ;;  %s1235_s6 = inlined_call_operand.hbm [shape: f32[32,96], index: 6, kind: input, shape index: {}]   ;;  %s1236_s7 = inlined_call_operand.hbm [shape: f32[32,32], index: 7, kind: input, shape index: {}]   ;;  %s1237_s8 = inlined_call_operand.vmem [shape: f32[4,32,32], index: 8, kind: input, shape index: {}]   ;;  %s1238_s9 = inlined_call_operand.vmem [shape: f32[1,32], index: 9, kind: input, shape index: {}]   ;;  %s1239_s10 = inlined_call_operand.vmem [shape: f32[32,8], index: 10, kind: input, shape index: {}]   ;;  %s1240_s11 = inlined_call_operand.vmem [shape: f32[1,8], index: 11, kind: input, shape index: {}]   ;;  %s1241_s12 = inlined_call_operand.hbm [shape: f32[2,8], index: 12, kind: output, shape index: {0}]   ;;  %s1242_s13 = inlined_call_operand.hbm [shape: f32[2,4,4], index: 13, kind: output, shape index: {1}]   ;;  %s1243_s14 = inlined_call_operand.hbm [shape: f32[2,32], index: 14, kind: output, shape index: {2}]   ;;  %s1244_s15 = inlined_call_operand.hbm [shape: f32[2,32], index: 15, kind: output, shape index: {3}]  }
   0x1   :  { %22 = vsyncpa [#allocation7], 0 }
   0x2   :  { %23 = vsyncpa [#allocation5], 0 }
   0x3   :  { %24 = vsyncpa [#allocation11], 0 }
   0x4   :  { %25 = vsyncpa [#allocation14], 0  ;;  %s53_s20 = sshll.u32 %s1235_s6, 4  ;;  %s961_s21 = smov [#allocation6]   ;;  %s54_s20 = int_to_ptr.hbm [resolvable:$true] %s53_s20 }
   0x5   :  { %s55_s22 = sshll.u32 %s961_s21, 4  ;;  %s38_s25 = sshll.u32 %s1233_s4, 4  ;;  %s56_s22 = int_to_ptr.vmem [resolvable:$true] %s55_s22  ;;  %s39_s25 = int_to_ptr.hbm [resolvable:$true] %s38_s25 }
   0x6   :  { %s962_s26 = smov 128   ;;  %s963_s27 = smov 8  }
   0x7   :  { %61 = dma.hbm_to_vmem [thread:$0]  %s54_s20, 512, %s56_s22, [#allocation7], %s962_s26, %s962_s26, %s963_s27  }
   0x8   :  { %s964_s28 = smov [#allocation3]   ;;  %s66_s17 = sshll.u32 %s1236_s7, 4  ;;  %s67_s17 = int_to_ptr.hbm [resolvable:$true] %s66_s17 }
   0x9   :  { %s40_s29 = sshll.u32 %s964_s28, 4  ;;  %s965_s6 = smov [#allocation8]   ;;  %s41_s29 = int_to_ptr.vmem [resolvable:$true] %s40_s29 }
   0xa   :  { %46 = dma.hbm_to_vmem [thread:$0]  %s39_s25, 1536, %s41_s29, [#allocation4], %s962_s26, %s962_s26, %s963_s27  }
   0xb   :  { %s68_s18 = sshll.u32 %s965_s6, 4  ;;  %s69_s18 = int_to_ptr.vmem [resolvable:$true] %s68_s18 }
   0xc   :  { %74 = dma.hbm_to_vmem [thread:$0]  %s67_s17, 512, %s69_s18, [#allocation7], %s962_s26, %s962_s26, %s963_s27  }
   0xd   :  { %951 = dma.done.wait [#allocation4], 1536  }
   0xe   :  { %952 = vsyncadd [#allocation4], 4294965760 }
   0xf   :  { %953 = dma.done.wait [#allocation7], 1024  }
  0x10   :  { %954 = vsyncadd [#allocation7], 4294966272  ;;  %v104_v0 = vlaneseq  ;;  %v102_v1 = vld [vmem:[%s1231_s2 + $0x28] sm:$0xff]  ;;  %v101_v2 = vld [vmem:[%s1231_s2 + $0x20] sm:$0xff]  ;;  %vm134_vm0 = vcmask 388096   ;;  %v966_v7 = vmov 0.0  }
  0x11   :  { %124 = vmatpush.msra.mxu0 %v102_v1  ;;  %v100_v4 = vld [vmem:[%s1231_s2 + $0x18] sm:$0xff]  ;;  %v761_v5 = vld [vmem:[%s1232_s3] ss:$0 sm:$0xff]  ;;  %v99_v6 = vld [vmem:[%s1231_s2 + $0x10] sm:$0xff]  ;;  %vm110_vm2 = vcmask 392192   ;;  %s968_s3 = smov 64  }
  0x12   :  { %v105_v3 = vshrl.u32 %v104_v0, 7  ;;  %v98_v9 = vld [vmem:[%s1231_s2 + $0x8] sm:$0xff]  ;;  %v97_v11 = vld [vmem:[%s1231_s2] sm:$0xff]  ;;  %v162_v14 = vld [vmem:[#allocation3 + $0x48] sm:$0xff]  ;;  %s967_s2 = smov 32   ;;  %vm149_vm3 = vcmask 261120  }
  0x13   :  { %125 = vmatpush.msra.mxu0 %v101_v2  ;;  %v164_v12 = vld [vmem:[#allocation3 + $0x58] sm:$0xff]  ;;  %v163_v13 = vld [vmem:[#allocation3 + $0x50] sm:$0xff]  ;;  %v161_v15 = vld [vmem:[#allocation3 + $0x40] sm:$0xff]  ;;  %vm151_vm4 = vcmask 523264   ;;  %vm169_vm5 = vcmask 785408   ;;  %vm224_vm6 = vcmask 253952  }
  0x14   :  { %vm107_vm1 = vcmp.eq.s32.totalorder %v105_v3, %v761_v5  ;;  %177 = vmatpush.msra.mxu1 %v164_v12  ;;  %v160_v16 = vld [vmem:[#allocation3 + $0x38] sm:$0xff]  ;;  %v159_v17 = vld [vmem:[#allocation3 + $0x30] sm:$0xff]  ;;  %v158_v18 = vld [vmem:[#allocation3 + $0x28] sm:$0xff]  ;;  %vm214_vm11 = vcmask 254976   ;;  %vm343_vm12 = vcmask 27648   ;;  %vm374_vm13 = vcmask 1043456  }
  0x15   :  { %126 = vmatpush.msra.mxu0 %v100_v4  ;;  %v715_v8 = vsel %vm107_vm1, 1.0, %v966_v7  ;;  %v157_v20 = vld [vmem:[#allocation3 + $0x20] sm:$0xff]  ;;  %v156_v21 = vld [vmem:[#allocation3 + $0x18] sm:$0xff]  ;;  %v155_v23 = vld [vmem:[#allocation3 + $0x10] sm:$0xff]  ;;  %vm370_vm14 = vcmask 31744   ;;  %vm474_vm15 = vcmask 1041409  }
  0x16   :  { %v135_v10 = vsel %vm134_vm0, %v715_v8, 0.0  ;;  %178 = vmatpush.msra.mxu1 %v163_v13  ;;  %v154_v28 = vld [vmem:[#allocation3 + $0x8] sm:$0xff]  ;;  %v153_v29 = vld [vmem:[#allocation3] sm:$0xff]  ;;  %v96_v30 = vld [vmem:[%s1230_s1] sm:$0x3]  ;;  %s665_s4 = sshll.u32 %s1242_s13, 4  ;;  %s666_s4 = int_to_ptr.hbm [resolvable:$true] %s665_s4 }
  0x17   :  { %127 = vmatpush.msra.mxu0 %v99_v6  ;;  %136 = vadd.xlane.f32.xlu0 %v135_v10  ;;  %v762_v35 = vld [vmem:[%s1234_s5] ss:$0 sm:$0xff]  ;;  %v254_v60 = vld [vmem:[#allocation6 + $0x18] sm:$0xff]  ;;  %v252_v62 = vld [vmem:[#allocation6 + $0x8] sm:$0xff]  ;;  %s970_s19 = smov [#allocation10]   ;;  %s971_s1 = smov 4  }
  0x18   :  { %179 = vmatpush.msra.mxu1 %v162_v14  ;;  %v95_v36 = vld [vmem:[%s1229_s0] sm:$0x3]  ;;  %s969_s0 = smov 96   ;;  %275 = vmatpush.msra.mxu2 %v254_v60  ;;  %v251_v63 = vld [vmem:[#allocation6] sm:$0xff]  ;;  %s972_s5 = smov [#allocation12]  }
  0x19   :  { %128 = vmatpush.msra.mxu0 %v98_v9  ;;  %v222_v39 = vrot.slane %v95_v36, 1  ;;  %225 = vst.msk [vmem:[#allocation2] sm:$0x1] %vm224_vm6, %v95_v36  ;;  %v253_v61 = vld [vmem:[#allocation6 + $0x10] sm:$0xff]  ;;  %s677_s20 = sshll.u32 %s972_s5, 4  ;;  %s679_s22 = sshll.u32 %s1243_s14, 4  ;;  %s678_s20 = int_to_ptr.vmem [resolvable:$true] %s677_s20  ;;  %s680_s22 = int_to_ptr.hbm [resolvable:$true] %s679_s22 }
  0x1a   :  { %180 = vmatpush.msra.mxu1 %v161_v15  ;;  %276 = vmatpush.msra.mxu2 %v253_v61  ;;  %v740_v60 = vld [vmem:[%s1237_s8 + $0x60] sm:$0xff]  ;;  %s690_s13 = sshll.u32 %s1244_s15, 4  ;;  %s973_s25 = smov [#allocation13]   ;;  %s691_s13 = int_to_ptr.hbm [resolvable:$true] %s690_s13 }
  0x1b   :  { %129 = vmatpush.msra.mxu0 %v97_v11  ;;  %226 = vst.msk [vmem:[#allocation2 + $0x4] sm:$0x1] %vm224_vm6, %v222_v39  ;;  %v428_v39 = vld [vmem:[#allocation8 + $0x10] sm:$0xff]  ;;  %s688_s26 = sshll.u32 %s973_s25, 4  ;;  %s974_s27 = smov [#allocation9]   ;;  %s689_s26 = int_to_ptr.vmem [resolvable:$true] %s688_s26 }
  0x1c   :  { %716 = vmatmul.msk.f32.vlgmr.msra.gmra.mxu0 %vm110_vm2, %v715_v8  ;;  %181 = vmatpush.msra.mxu1 %v160_v16  ;;  %s653_s28 = sshll.u32 %s974_s27, 4  ;;  %s655_s30 = sshll.u32 %s1241_s12, 4  ;;  %s654_s28 = int_to_ptr.vmem [resolvable:$true] %s653_s28  ;;  %s656_s30 = int_to_ptr.hbm [resolvable:$true] %s655_s30 }
  0x1d   :  { %277 = vmatpush.msra.mxu2 %v252_v62 }
  0x1e   :  { %182 = vmatpush.msra.mxu1 %v159_v17 }
  0x1f   :  { %278 = vmatpush.msra.mxu2 %v251_v63 }
  0x20   :  { %183 = vmatpush.msra.mxu1 %v158_v18 }
  0x22   :  { %184 = vmatpush.msra.mxu1 %v157_v20 }
  0x24   :  { %185 = vmatpush.msra.mxu1 %v156_v21 }
  0x26   :  { %186 = vmatpush.msra.mxu1 %v155_v23 }
  0x28   :  { %187 = vmatpush.msra.mxu1 %v154_v28 }
  0x2a   :  { %188 = vmatpush.msra.mxu1 %v153_v29 }
  0x8a   :  { %v137_v19 = vpop.xlane.xlu0 %136 }
  0x8b   :  { %v138_v22 = vmax.f32 %v137_v19, 1.0 }
  0x8d   :  { %765 = vrcp.f32 %v138_v22 }
  0x93   :  { %v766_v24 = vpop.eup %765 }
  0x99   :  { %v131_v25 = vpop.f32.mrf.mxu0 }
  0x9a   :  { %v140_v26 = vmul.f32 %v766_v24, %v131_v25 }
  0x9c   :  { %142 = vrot.lane.b32.xlu0 %v140_v26, %s967_s2  ;;  %v145_v27 = vrot.slane %v140_v26, 2 }
  0x9e   :  { %146 = vrot.lane.b32.xlu1 %v145_v27, %s968_s3 }
 0x10e   :  { %v143_v31 = vpop.permute.xlu0 %142 }
 0x10f   :  { %v150_v32 = vsel %vm149_vm3, %v96_v30, %v143_v31 }
 0x110   :  { %v147_v33 = vpop.permute.xlu1 %146 }
 0x111   :  { %v152_v34 = vsel %vm151_vm4, %v150_v32, %v147_v33 }
 0x112   :  { %717 = vmatmul.msk.f32.vlgmr.msra.gmra.mxu1 %vm169_vm5, %v152_v34 }
 0x18f   :  { %v190_v37 = vpop.f32.mrf.mxu1 }
 0x190   :  { %v191_v38 = vadd.f32 %v762_v35, %v190_v37 }
 0x192   :  { %v718_v40 = vmul.f32 -1.442695, %v191_v38 }
 0x194   :  { %767 = vpow2.f32 %v718_v40  ;;  %v427_v40 = vld [vmem:[#allocation8 + $0x8] sm:$0xff] }
 0x19a   :  { %v768_v41 = vpop.eup %767 }
 0x19b   :  { %v196_v42 = vadd.f32 1.0, %v768_v41  ;;  %v426_v41 = vld [vmem:[#allocation8] sm:$0xff] }
 0x19d   :  { %769 = vrcp.f32 %v196_v42  ;;  %v208_v46 = vand.u32 2147483648, %v196_v42  ;;  %v206_v48 = vand.u32 2147483647, %v196_v42  ;;  %vm202_vm8 = vweird.f32 %v196_v42 }
 0x19f   :  { %v209_v50 = vor.u32 1.1754944e-38, %v208_v46  ;;  %vm207_vm10 = vcmp.eq.f32.partialorder %v206_v48, 8.507059e+37  ;;  %v733_v46 = vld [vmem:[%s1237_s8 + $0x38] sm:$0xff] }
 0x1a0   :  { %v743_v48 = vld [vmem:[%s1237_s8 + $0x78] sm:$0xff] }
 0x1a1   :  { %586 = vmatpush.msrb.mxu1 %v743_v48 }
 0x1a3   :  { %v770_v43 = vpop.eup %769 }
 0x1a4   :  { %v198_v44 = vmul.f32 %v770_v43, %v196_v42  ;;  %vm203_vm7 = vweird.f32 %v770_v43 }
 0x1a5   :  { %vm204_vm9 = vmor %vm202_vm8, %vm203_vm7 }
 0x1a6   :  { %v199_v45 = vsub.f32 1.0, %v198_v44 }
 0x1a8   :  { %v200_v47 = vmul.f32 %v770_v43, %v199_v45  ;;  %v471_v45 = vld [vmem:[%s1237_s8 + $0x18] sm:$0xff] }
 0x1aa   :  { %v201_v49 = vadd.f32 %v770_v43, %v200_v47  ;;  %v738_v47 = vld [vmem:[%s1237_s8 + $0x58] sm:$0xff] }
 0x1ac   :  { %v205_v51 = vsel %vm204_vm9, %v770_v43, %v201_v49  ;;  %v470_v49 = vld [vmem:[%s1237_s8 + $0x10] sm:$0xff] }
 0x1ad   :  { %v210_v52 = vsel %vm207_vm10, %v209_v50, %v205_v51  ;;  %v732_v50 = vld [vmem:[%s1237_s8 + $0x30] sm:$0xff] }
 0x1ae   :  { %v212_v53 = vmul.f32 %v210_v52, %v191_v38  ;;  %v429_v38 = vld [vmem:[#allocation8 + $0x18] sm:$0xff]  ;;  %v737_v51 = vld [vmem:[%s1237_s8 + $0x50] sm:$0xff] }
 0x1af   :  { %v742_v52 = vld [vmem:[%s1237_s8 + $0x70] sm:$0xff] }
 0x1b0   :  { %v1098_v54 = vadd.f32 %v212_v53, %v152_v34  ;;  %v469_v53 = vld [vmem:[%s1237_s8 + $0x8] sm:$0xff]  ;;  %587 = vmatpush.msrb.mxu1 %v742_v52 }
 0x1b2   :  { %229 = vst.msk [vmem:[#allocation2 + $0x1] sm:$0x1] %vm224_vm6, %v1098_v54  ;;  %v231_v55 = vperm.slane %v1098_v54, 0  ;;  %v227_v56 = vrot.slane %v1098_v54, 1 }
 0x1b3   :  { %215 = vst.msk [vmem:[#allocation12] sm:$0x3] %vm214_vm11, %v1098_v54 }
 0x1b4   :  { %233 = vrot.lane.b32.xlu1 %v231_v55, %s969_s0  ;;  %v232_v57 = vperm.slane %v227_v56, 0  ;;  %230 = vst.msk [vmem:[#allocation2 + $0x5] sm:$0x1] %vm224_vm6, %v227_v56  ;;  %v741_v56 = vld [vmem:[%s1237_s8 + $0x68] sm:$0xff] }
 0x1b5   :  { %588 = vmatpush.msrb.mxu1 %v741_v56 }
 0x1b6   :  { %235 = vrot.lane.b32.xlu2 %v232_v57, %s969_s0 }
 0x1b7   :  { %589 = vmatpush.msrb.mxu1 %v740_v60 }
 0x1bc   :  { %243 = vrot.lane.b32.xlu1 %v232_v57, %s968_s3  ;;  %v468_v57 = vld [vmem:[%s1237_s8] sm:$0xff] }
 0x1be   :  { %241 = vrot.lane.b32.xlu2 %v231_v55, %s968_s3  ;;  %v736_v55 = vld [vmem:[%s1237_s8 + $0x48] sm:$0xff] }
 0x210   :  { %v236_v58 = vpop.permute.xlu2 %235 }
 0x211   :  { %240 = vst.msk [vmem:[#allocation2 + $0x6] sm:$0x1] %vm224_vm6, %v236_v58  ;;  %v730_v58 = vld [vmem:[%s1237_s8 + $0x20] sm:$0xff] }
 0x218   :  { %v242_v59 = vpop.permute.xlu2 %241 }
 0x219   :  { %247 = vst.msk [vmem:[#allocation2 + $0x3] sm:$0x1] %vm224_vm6, %v242_v59  ;;  %v735_v59 = vld [vmem:[%s1237_s8 + $0x40] sm:$0xff] }
 0x226   :  { %v234_v0 = vpop.permute.xlu1 %233 }
 0x227   :  { %239 = vst.msk [vmem:[#allocation2 + $0x2] sm:$0x1] %vm224_vm6, %v234_v0 }
 0x22e   :  { %v1114_v1 = vld [vmem:[#allocation2] sm:$0xf]  ;;  %v244_v2 = vpop.permute.xlu1 %243 }
 0x22f   :  { %257 = vst [vmem:[#allocation1] ss:$2 sm:$0xff] %v1114_v1 }
 0x230   :  { %248 = vst.msk [vmem:[#allocation2 + $0x7] sm:$0x1] %vm224_vm6, %v244_v2 }
 0x237   :  { %v1118_v3 = vld [vmem:[#allocation2 + $0x4] sm:$0xf] }
 0x238   :  { %259 = vst [vmem:[#allocation1 + $0x1] ss:$2 sm:$0xff] %v1118_v3 }
 0x23f   :  { %v260_v4 = vld.sshfl [vmem:[#allocation1] sm:$0xff pattern:$0x75316420] }
 0x240   :  { %719 = vmatmul.msk.f32.vlgmr.msra.gmra.mxu2 %vm149_vm3, %v260_v4 }
 0x2c3   :  { %v280_v5 = vpop.f32.mrf.mxu2 }
 0x2c4   :  { %285 = vst [vmem:[#allocation1] ss:$2 sm:$0xff] %v280_v5  ;;  %v284_v6 = vrot.slane %v280_v5, 4 }
 0x2cb   :  { %v286_v7 = vld.sshfl [vmem:[#allocation1] sm:$0xff pattern:$0x75316420] }
 0x2cc   :  { %313 = vst [vmem:[#allocation1] ss:$2 sm:$0xff] %v284_v6  ;;  %287 = vrot.lane.b32.xlu2 %v286_v7, %s969_s0 }
 0x2d3   :  { %v314_v8 = vld.sshfl [vmem:[#allocation1] sm:$0xff pattern:$0x75316420] }
 0x2d4   :  { %366 = vst [vmem:[#allocation1] ss:$2 sm:$0xff] %v280_v5  ;;  %315 = vrot.lane.b32.xlu1 %v314_v8, %s969_s0 }
 0x2db   :  { %v367_v9 = vld.sshfl [vmem:[#allocation1] sm:$0xff pattern:$0x75316420] }
 0x2dc   :  { %397 = vst [vmem:[#allocation1] ss:$2 sm:$0xff] %v284_v6 }
 0x2e3   :  { %v398_v29 = vld.sshfl [vmem:[#allocation1] sm:$0xff pattern:$0x75316420] }
 0x326   :  { %v288_v10 = vpop.permute.xlu2 %287 }
 0x327   :  { %720 = vmatpush.xpose.msk.msra.mxu3 %vm149_vm3, %v288_v10 }
 0x32a   :  { %721 = vmatmul.msk.f32.vlgmr.msra.gmra.mxu3 %vm149_vm3, %v280_v5 }
 0x346   :  { %v316_v11 = vpop.permute.xlu1 %315 }
 0x347   :  { %722 = vmatpush.xpose.msk.msrb.mxu3 %vm149_vm3, %v316_v11 }
 0x34a   :  { %723 = vmatmul.msk.f32.vlgmr.msrb.gmra.mxu3 %vm149_vm3, %v284_v6 }
 0x34b   :  { %455 = vmatpush.msra.mxu3 %v429_v38 }
 0x34d   :  { %456 = vmatpush.msra.mxu3 %v428_v39 }
 0x34f   :  { %457 = vmatpush.msra.mxu3 %v427_v40  ;;  %v764_v40 = vld [vmem:[%s1240_s11] ss:$0 sm:$0xff] }
 0x351   :  { %458 = vmatpush.msra.mxu3 %v426_v41 }
 0x353   :  { %555 = vmatpush.msrb.mxu3 %v738_v47 }
 0x355   :  { %556 = vmatpush.msrb.mxu3 %v737_v51 }
 0x357   :  { %557 = vmatpush.msrb.mxu3 %v736_v55 }
 0x359   :  { %558 = vmatpush.msrb.mxu3 %v735_v59 }
 0x3ad   :  { %v310_v12 = vpop.f32.mrf.mxu3 }
 0x3ae   :  { %v341_v13 = vmul.f32 0.17677669, %v310_v12 }
 0x3b0   :  { %v344_v14 = vsel %vm343_vm12, %v341_v13, -inf }
 0x3b1   :  { %345 = vmax.xlane.f32.xlu2 %v344_v14 }
 0x3cd   :  { %v338_v15 = vpop.f32.mrf.mxu3 }
 0x3ce   :  { %v342_v16 = vmul.f32 0.17677669, %v338_v15  ;;  %v618_v15 = vld [vmem:[%s1239_s10 + $0x18] sm:$0xff] }
 0x3d0   :  { %v347_v17 = vsel %vm343_vm12, %v342_v16, -inf }
 0x3d1   :  { %348 = vmax.xlane.f32.xlu0 %v347_v17 }
 0x3e5   :  { %368 = vrot.lane.b32.xlu0 %v367_v9, %s968_s3 }
 0x424   :  { %v346_v18 = vpop.xlane.xlu2 %345 }
 0x425   :  { %v350_v19 = vsub.f32 %v341_v13, %v346_v18  ;;  %v763_v13 = vld [vmem:[%s1238_s9] ss:$0 sm:$0xff]  ;;  %v617_v18 = vld [vmem:[%s1239_s10 + $0x10] sm:$0xff] }
 0x427   :  { %v352_v20 = vmul.f32 1.442695, %v350_v19 }
 0x429   :  { %771 = vpow2.f32 %v352_v20 }
 0x42f   :  { %v772_v21 = vpop.eup %771 }
 0x430   :  { %v356_v22 = vsel %vm343_vm12, %v772_v21, 0.0 }
 0x431   :  { %357 = vadd.xlane.f32.xlu1 %v356_v22 }
 0x444   :  { %v349_v23 = vpop.xlane.xlu0 %348 }
 0x445   :  { %v351_v24 = vsub.f32 %v342_v16, %v349_v23  ;;  %v615_v23 = vld [vmem:[%s1239_s10] sm:$0xff] }
 0x447   :  { %v354_v25 = vmul.f32 1.442695, %v351_v24 }
 0x449   :  { %773 = vpow2.f32 %v354_v25 }
 0x44a   :  { %217 = vrot.lane.b32.xlu1 %v1098_v54, %s969_s0  ;;  %v731_v54 = vld [vmem:[%s1237_s8 + $0x28] sm:$0xff]  ;;  %s663_s0 = sshll.u32 %s970_s19, 4  ;;  %s664_s0 = int_to_ptr.vmem [resolvable:$true] %s663_s0 }
 0x44f   :  { %v774_v26 = vpop.eup %773 }
 0x450   :  { %v359_v27 = vsel %vm343_vm12, %v774_v26, 0.0 }
 0x451   :  { %360 = vadd.xlane.f32.xlu2 %v359_v27 }
 0x457   :  { %v369_v28 = vpop.permute.xlu0 %368 }
 0x458   :  { %724 = vmatpush.msk.msrb.mxu2 %vm374_vm13, %v369_v28 }
 0x45a   :  { %490 = vmatpush.msra.mxu2 %v471_v45 }
 0x45c   :  { %491 = vmatpush.msra.mxu2 %v470_v49 }
 0x45e   :  { %492 = vmatpush.msra.mxu2 %v469_v53 }
 0x460   :  { %493 = vmatpush.msra.mxu2 %v468_v57 }
 0x469   :  { %399 = vrot.lane.b32.xlu2 %v398_v29, %s968_s3 }
 0x4a4   :  { %v358_v30 = vpop.xlane.xlu1 %357 }
 0x4a5   :  { %775 = vrcp.f32 %v358_v30 }
 0x4ab   :  { %v776_v31 = vpop.eup %775 }
 0x4ac   :  { %v364_v32 = vmul.f32 %v776_v31, %v772_v21  ;;  %v616_v21 = vld [vmem:[%s1239_s10 + $0x8] sm:$0xff] }
 0x4ae   :  { %725 = vmatmul.msk.f32.vlgmr.msrb.gmra.mxu2 %vm370_vm14, %v364_v32  ;;  %465 = vst.msk [vmem:[#allocation10] sm:$0xf] %vm343_vm12, %v364_v32 }
 0x4af   :  { %638 = vmatpush.msrb.mxu2 %v618_v15 }
 0x4b1   :  { %639 = vmatpush.msrb.mxu2 %v617_v18 }
 0x4b3   :  { %640 = vmatpush.msrb.mxu2 %v616_v21 }
 0x4b5   :  { %641 = vmatpush.msrb.mxu2 %v615_v23 }
 0x4bc   :  { %v218_v33 = vpop.permute.xlu1 %217 }
 0x4bd   :  { %220 = vst.msk [vmem:[#allocation13] sm:$0x3] %vm214_vm11, %v218_v33 }
 0x4be   :  { %693 = dma.vmem_to_hbm [thread:$0]  %s689_s26, 32, %s691_s13, [#allocation14]  }
 0x4c4   :  { %v361_v34 = vpop.xlane.xlu2 %360 }
 0x4c5   :  { %777 = vrcp.f32 %v361_v34 }
 0x4cb   :  { %v778_v35 = vpop.eup %777 }
 0x4cc   :  { %v400_v36 = vpop.permute.xlu2 %399  ;;  %v365_v37 = vmul.f32 %v778_v35, %v774_v26 }
 0x4cd   :  { %726 = vmatpush.msk.msrb.mxu0 %vm374_vm13, %v400_v36 }
 0x4ce   :  { %727 = vmatmul.msk.f32.vlgmr.msrb.gmra.mxu0 %vm370_vm14, %v365_v37  ;;  %466 = vst.msk [vmem:[#allocation10 + $0x4] sm:$0xf] %vm343_vm12, %v365_v37 }
 0x4cf   :  { %524 = vmatpush.msra.mxu0 %v733_v46  ;;  %671 = dma.vmem_to_hbm [thread:$0]  %s664_s0, 128, %s666_s4, [#allocation11], %s968_s3, %s968_s3, %s971_s1  }
 0x4d0   :  { %682 = dma.vmem_to_hbm [thread:$0]  %s678_s20, 32, %s680_s22, [#allocation11]  }
 0x4d1   :  { %525 = vmatpush.msra.mxu0 %v732_v50 }
 0x4d3   :  { %526 = vmatpush.msra.mxu0 %v731_v54 }
 0x4d5   :  { %527 = vmatpush.msra.mxu0 %v730_v58 }
 0x531   :  { %v394_v42 = vpop.f32.mrf.mxu2 }
 0x532   :  { %432 = vst [vmem:[#allocation1] ss:$2 sm:$0xff] %v394_v42 }
 0x54b   :  { %v423_v43 = vpop.f32.mrf.mxu0 }
 0x54c   :  { %434 = vst [vmem:[#allocation1 + $0x1] ss:$2 sm:$0xff] %v423_v43 }
 0x553   :  { %v435_v44 = vld.sshfl [vmem:[#allocation1] sm:$0xff pattern:$0x75316420] }
 0x554   :  { %436 = vst [vmem:[#allocation1] ss:$2 sm:$0xff] %v1114_v1  ;;  %728 = vmatmul.msk.f32.vlgmr.msra.gmra.mxu3 %vm149_vm3, %v435_v44 }
 0x555   :  { %438 = vst [vmem:[#allocation1 + $0x1] ss:$2 sm:$0xff] %v1118_v3 }
 0x55c   :  { %v439_v61 = vld.sshfl [vmem:[#allocation1] sm:$0xff pattern:$0x75316420] }
 0x5d7   :  { %v460_v62 = vpop.f32.mrf.mxu3 }
 0x5d8   :  { %v461_v63 = vadd.f32 %v460_v62, %v439_v61 }
 0x5da   :  { %v464_v0 = vrot.slane %v461_v63, 4  ;;  %v472_v1 = vperm.slane %v461_v63, 0  ;;  %v507_v2 = vperm.slane %v461_v63, 1  ;;  %v538_v3 = vperm.slane %v461_v63, 2 }
 0x5db   :  { %v569_v4 = vperm.slane %v461_v63, 3 }
 0x5dc   :  { %v473_v5 = vperm.slane %v464_v0, 0  ;;  %v508_v6 = vperm.slane %v464_v0, 1  ;;  %v539_v7 = vperm.slane %v464_v0, 2  ;;  %v570_v8 = vperm.slane %v464_v0, 3 }
 0x5de   :  { %v475_v9 = vsel %vm474_vm15, %v473_v5, %v472_v1  ;;  %v509_v10 = vsel %vm474_vm15, %v508_v6, %v507_v2  ;;  %v540_v11 = vsel %vm474_vm15, %v539_v7, %v538_v3  ;;  %v571_v12 = vsel %vm474_vm15, %v570_v8, %v569_v4 }
 0x5df   :  { %729 = vmatmul.msk.f32.vlgmr.msra.gmra.mxu2 %vm149_vm3, %v475_v9  ;;  %734 = vmatmul.msk.f32.vlgmr.msra.gmra.mxu0 %vm149_vm3, %v509_v10 }
 0x5e0   :  { %739 = vmatmul.msk.f32.vlgmr.msrb.gmra.mxu3 %vm149_vm3, %v540_v11  ;;  %744 = vmatmul.msk.f32.vlgmr.msrb.gmra.mxu1 %vm149_vm3, %v571_v12 }
 0x65c   :  { %v529_v17 = vpop.f32.mrf.mxu0 }
 0x65d   :  { %v591_v24 = vpop.f32.mrf.mxu1 }
 0x662   :  { %v495_v14 = vpop.f32.mrf.mxu2 }
 0x663   :  { %v501_v16 = vadd.f32 %v763_v13, %v495_v14  ;;  %v560_v20 = vpop.f32.mrf.mxu3 }
 0x665   :  { %v532_v19 = vadd.f32 %v529_v17, %v501_v16 }
 0x667   :  { %v563_v22 = vadd.f32 %v560_v20, %v532_v19 }
 0x669   :  { %v594_v25 = vadd.f32 %v591_v24, %v563_v22 }
 0x66b   :  { %v745_v26 = vmul.f32 -1.442695, %v594_v25 }
 0x66d   :  { %779 = vpow2.f32 %v745_v26 }
 0x673   :  { %v780_v27 = vpop.eup %779 }
 0x674   :  { %v598_v28 = vadd.f32 1.0, %v780_v27 }
 0x676   :  { %781 = vrcp.f32 %v598_v28  ;;  %v610_v32 = vand.u32 2147483648, %v598_v28  ;;  %v608_v34 = vand.u32 2147483647, %v598_v28  ;;  %vm604_vm1 = vweird.f32 %v598_v28 }
 0x678   :  { %v611_v36 = vor.u32 1.1754944e-38, %v610_v32  ;;  %vm609_vm4 = vcmp.eq.f32.partialorder %v608_v34, 8.507059e+37 }
 0x67c   :  { %v782_v29 = vpop.eup %781 }
 0x67d   :  { %v600_v30 = vmul.f32 %v782_v29, %v598_v28  ;;  %vm605_vm0 = vweird.f32 %v782_v29 }
 0x67e   :  { %vm606_vm2 = vmor %vm604_vm1, %vm605_vm0 }
 0x67f   :  { %v601_v31 = vsub.f32 1.0, %v600_v30 }
 0x681   :  { %v602_v33 = vmul.f32 %v782_v29, %v601_v31 }
 0x683   :  { %v603_v35 = vadd.f32 %v782_v29, %v602_v33 }
 0x685   :  { %v607_v37 = vsel %vm606_vm2, %v782_v29, %v603_v35 }
 0x686   :  { %v612_v38 = vsel %vm609_vm4, %v611_v36, %v607_v37 }
 0x687   :  { %v614_v39 = vmul.f32 %v612_v38, %v594_v25 }
 0x689   :  { %746 = vmatmul.msk.f32.vlgmr.msrb.gmra.mxu2 %vm149_vm3, %v614_v39  ;;  %vm646_vm3 = vcmask 58368  }
 0x70c   :  { %v643_v41 = vpop.f32.mrf.mxu2 }
 0x70d   :  { %v644_v42 = vadd.f32 %v764_v40, %v643_v41 }
 0x70f   :  { %647 = vst.msk [vmem:[#allocation9] sm:$0x3] %vm646_vm3, %v644_v42 }
 0x710   :  { %658 = dma.vmem_to_hbm [thread:$0]  %s654_s28, 32, %s656_s30, [#allocation5]  }
 0x711   :  { %955 = dma.done.wait [#allocation5], 32  }
 0x712   :  { %956 = vsyncadd [#allocation5], 4294967264 }
 0x713   :  { %957 = dma.done.wait [#allocation11], 160  }
 0x714   :  { %958 = vsyncadd [#allocation11], 4294967136 }
 0x715   :  { %959 = dma.done.wait [#allocation14], 32  }
 0x716   :  { %960 = vsyncadd [#allocation14], 4294967264 }
 0x717   :  { %710 = vsyncpa [#allocation4], 1 }
 0x718   :  { %711 = vsyncpa [#allocation7], 1 }
 0x719   :  { %712 = vsyncpa [#allocation5], 1 }
 0x71a   :  { %713 = vsyncpa [#allocation11], 1 }
 0x71b   :  { %714 = vsyncpa [#allocation14], 1 }

</bundles_post_ra>
